<compile_context>
chip_gen: v6e
topology: v6e:2x2x1
jax: 0.10.0
libtpu: 0.0.40
codegen_flags: <defaults>
</compile_context>

<pallas_src>
import functools
import math

import jax
import jax.numpy as jnp
from jax.experimental import pallas as pl
from jax.experimental.pallas import tpu as pltpu


def _mha_kernel(x_ref, wqkvT_ref, bqkv_ref, wo3_ref, bo_ref,
                scores_ref, out_ref, *, num_heads, head_dim):
    Bt, N, E = x_ref.shape
    H, hd = num_heads, head_dim

    # ---- fused QKV projection: one (Bt*N, E) x (E, 3E) MXU matmul ----------
    # NOTE: Bt*N ideally a multiple of 16 (bf16 sublane pack) so this reshape
    # is a free view; the softmax scale is already folded into the Wq columns.
    x2d = x_ref[...].reshape(Bt * N, E)                                  # bf16
    qkv = jnp.dot(x2d, wqkvT_ref[...],
                  preferred_element_type=jnp.float32) + bqkv_ref[...]   # f32
    qkv = qkv.astype(jnp.bfloat16).reshape(Bt, N, 3 * E)   # bf16 MXU operands

    # f32 accumulator for the fused output projection (no VMEM scratch).
    acc = jnp.zeros((Bt * N, E), jnp.float32)

    # ---- per-head attention (H is small & static -> unrolled loop) ----------
    for h in range(H):
        qh = qkv[:, :, h * hd:(h + 1) * hd]                      # (Bt, N, hd)
        kh = qkv[:, :, E + h * hd:E + (h + 1) * hd]              # (Bt, N, hd)
        vh = qkv[:, :, 2 * E + h * hd:2 * E + (h + 1) * hd]      # (Bt, N, hd)

        # scale already folded into Wq -> no per-step multiply here.
        s = jnp.einsum("bqd,bkd->bqk", qh, kh,
                       preferred_element_type=jnp.float32)              # f32
        m = jnp.max(s, axis=-1, keepdims=True)
        e = jnp.exp(s - m)
        inv = 1.0 / jnp.sum(e, axis=-1, keepdims=True)    # exact: rows sum to 1
        p = e * inv

        # Single f32->bf16 cast of p, reused for the PV matmul (and for the
        # scores store when a bf16 scores output is requested).
        p_bf = p.astype(jnp.bfloat16)
        if scores_ref.dtype == jnp.bfloat16:
            scores_ref[:, h, :, :] = p_bf
        else:
            scores_ref[:, h, :, :] = p.astype(scores_ref.dtype)

        # TODO(synk): attention-weight dropout omitted (eval mode / p == 0).

        oh = jnp.einsum("bqk,bkd->bqd", p_bf, vh,
                        preferred_element_type=jnp.float32)       # (Bt, N, hd)
        # Fused output projection: accumulate this head's contribution on the
        # MXU path instead of staging head outputs in a scratch buffer.
        acc = acc + jnp.dot(oh.reshape(Bt * N, hd).astype(jnp.bfloat16),
                            wo3_ref[h],                           # (hd, E)
                            preferred_element_type=jnp.float32)

    out_ref[...] = (acc + bo_ref[...]).reshape(Bt, N, E).astype(out_ref.dtype)


def _vmem_capacity_bytes():
    """Per-core VMEM capacity; conservative 64 MiB (v7x) fallback."""
    try:
        info = pltpu.get_tpu_info()
        return int(getattr(info, "vmem_capacity_bytes", 64 * 1024 * 1024))
    except Exception:
        return 64 * 1024 * 1024


def _vmem_bytes_estimate(Bt, N, E, H, scores_itemsize):
    """Rough per-grid-step VMEM footprint (double-buffered blocks + temps)."""
    hd = E // H
    rows = Bt * N
    blocks = 2 * (rows * E * 2                       # x block (bf16)
                  + rows * E * 4                     # out block (f32)
                  + Bt * H * N * N * scores_itemsize)  # scores block
    weights = 2 * (E * 3 * E * 2 + 3 * E * 4 + E * E * 2 + E * 4)
    temps = (rows * 3 * E * (4 + 2)                  # qkv f32 + bf16 copy
             + 4 * Bt * N * N * 4                    # s / e / p / p_bf
             + rows * E * 4                          # output-proj accumulator
             + rows * hd * 4)                        # per-head PV output
    return int(1.5 * (blocks + weights + temps))     # safety margin


def _pick_batch_tile(B, N, E, H, scores_itemsize, vmem_budget):
    """Largest divisor of B whose per-step footprint fits the VMEM budget,
    capped at ~512 projection rows, and leaving >= 2 grid steps so the
    'parallel' grid axis can shard across v7x's two TensorCores."""
    max_bt = B if B < 2 else max(1, B // 2)
    best = 1
    for d in range(1, max_bt + 1):
        if B % d != 0:
            continue
        if d * N > 512:
            continue
        if _vmem_bytes_estimate(d, N, E, H, scores_itemsize) > vmem_budget:
            continue
        best = d
    return best


def multi_head_attention(x, params, *, num_heads, batch_tile=None,
                         scores_dtype=jnp.float32):
    """x: [B, N, E] float32.  params: dict of (weight, bias) per projection.

    scores_dtype: dtype of the returned attention weights.  float32 matches
    the PyTorch module; pass jnp.bfloat16 to halve the dominant HBM writeback
    when the caller does not need full precision scores.
    """
    B, N, E = x.shape
    assert E % num_heads == 0, "embed_dim must be divisible by num_heads"
    head_dim = E // num_heads
    scale = 1.0 / math.sqrt(head_dim)

    wq, bq = params["query"]
    wk, bk = params["key"]
    wv, bv = params["value"]
    wo, bo = params["out"]

    # Fused, pre-transposed QKV weight: y = x @ [s*Wq^T | Wk^T | Wv^T] + bias.
    # The 1/sqrt(head_dim) softmax scale is folded into the Q columns/bias.
    wqkvT = jnp.concatenate([(wq * scale).T, wk.T, wv.T],
                            axis=1).astype(jnp.bfloat16)           # (E, 3E)
    bqkv = jnp.concatenate([bq * scale, bk, bv]
                           ).reshape(1, 3 * E).astype(jnp.float32)
    # Output-projection weight stored head-major as (H, hd, E) so the kernel
    # grabs each head's (hd, E) slab with a clean leading-dim index.
    wo3 = wo.T.reshape(num_heads, head_dim, E).astype(jnp.bfloat16)
    bo2 = bo.reshape(1, E).astype(jnp.float32)
    x_bf = x.astype(jnp.bfloat16)

    scores_itemsize = jnp.dtype(scores_dtype).itemsize
    vmem_cap = _vmem_capacity_bytes()
    if batch_tile is None:
        Bt = _pick_batch_tile(B, N, E, num_heads, scores_itemsize,
                              int(0.8 * vmem_cap))
    else:
        Bt = batch_tile
    assert B % Bt == 0, "batch tile must divide batch size"

    est = _vmem_bytes_estimate(Bt, N, E, num_heads, scores_itemsize)
    vmem_limit = int(min(vmem_cap, max(2 * est, 32 * 1024 * 1024)))

    kernel = functools.partial(_mha_kernel, num_heads=num_heads,
                               head_dim=head_dim)

    # Weights/biases: constant index_map -> fetched once, resident all grid.
    wqkv_spec = pl.BlockSpec((E, 3 * E), lambda b: (0, 0))
    bqkv_spec = pl.BlockSpec((1, 3 * E), lambda b: (0, 0))
    wo_spec = pl.BlockSpec((num_heads, head_dim, E), lambda b: (0, 0, 0))
    bo_spec = pl.BlockSpec((1, E), lambda b: (0, 0))

    scores, out = pl.pallas_call(
        kernel,
        out_shape=(
            jax.ShapeDtypeStruct((B, num_heads, N, N), scores_dtype),
            jax.ShapeDtypeStruct((B, N, E), jnp.float32),
        ),
        grid_spec=pltpu.PrefetchScalarGridSpec(
            num_scalar_prefetch=0,
            grid=(B // Bt,),
            in_specs=[
                pl.BlockSpec((Bt, N, E), lambda b: (b, 0, 0)),   # x (bf16)
                wqkv_spec, bqkv_spec,                            # fused QKV
                wo_spec, bo_spec,                                # out proj
            ],
            out_specs=[
                pl.BlockSpec((Bt, num_heads, N, N), lambda b: (b, 0, 0, 0)),
                pl.BlockSpec((Bt, N, E), lambda b: (b, 0, 0)),
            ],
        ),
        compiler_params=pltpu.CompilerParams(
            dimension_semantics=("parallel",),
            vmem_limit_bytes=vmem_limit),
    )(x_bf, wqkvT, bqkv, wo3, bo2)
    return scores, out


def _reference(x, params, num_heads):
    """Pure-JAX reference mirroring the PyTorch forward (dropout=0 / eval),
    with the same bf16-operand / f32-accumulation precision as the kernel."""
    B, N, E = x.shape
    hd = E // num_heads
    f32 = jnp.float32
    xb = x.astype(jnp.bfloat16)

    def lin(v, w, b):
        return jnp.einsum("bne,eo->bno", v, w.T.astype(jnp.bfloat16),
                          preferred_element_type=f32) + b

    def split_heads(t):
        return (t.reshape(B, N, num_heads, hd)
                .transpose(0, 2, 1, 3).astype(jnp.bfloat16))

    q = split_heads(lin(xb, *params["query"]))
    k = split_heads(lin(xb, *params["key"]))
    v = split_heads(lin(xb, *params["value"]))
    s = jnp.einsum("bhqd,bhkd->bhqk", q, k,
                   preferred_element_type=f32) / math.sqrt(hd)
    s = jax.nn.softmax(s, axis=-1)
    a = jnp.einsum("bhqk,bhkd->bhqd", s.astype(jnp.bfloat16), v,
                   preferred_element_type=f32)
    a = a.transpose(0, 2, 1, 3).reshape(B, N, E).astype(jnp.bfloat16)
    out = jnp.einsum("bne,eo->bno", a,
                     params["out"][0].T.astype(jnp.bfloat16),
                     preferred_element_type=f32) + params["out"][1]
    return s, out


if __name__ == "__main__":
    B, N, E, H = 2, 8, 32, 4   # batch, num_patches, embed_dim, num_heads
    key = jax.random.PRNGKey(0)
    keys = jax.random.split(key, 9)

    bound = 1.0 / math.sqrt(E)   # PyTorch nn.Linear default init range
    def make_linear(kw, kb):
        w = jax.random.uniform(kw, (E, E), jnp.float32, -bound, bound)
        b = jax.random.uniform(kb, (E,), jnp.float32, -bound, bound)
        return w, b

    params = {
        "query": make_linear(keys[0], keys[1]),
        "key":   make_linear(keys[2], keys[3]),
        "value": make_linear(keys[4], keys[5]),
        "out":   make_linear(keys[6], keys[7]),
    }
    x = jax.random.normal(keys[8], (B, N, E), jnp.float32)

    scores, out = multi_head_attention(x, params, num_heads=H)
    jax.block_until_ready((scores, out))

    s_ref, o_ref = _reference(x, params, H)
    assert scores.shape == (B, H, N, N) and out.shape == (B, N, E)
    assert jnp.allclose(scores, s_ref, atol=1e-2, rtol=1e-2)
    assert jnp.allclose(out, o_ref, atol=1e-2, rtol=1e-2)

    print("KERNEL_OK")
</pallas_src>

<mosaic_0001>
module attributes {stable_mosaic.version = 11 : i64} {
  func.func @_mha_kernel(%arg0: i32, %arg1: memref<1x8x32xbf16, #tpu.memory_space<vmem>>, %arg2: memref<32x96xbf16, #tpu.memory_space<vmem>>, %arg3: memref<1x96xf32, #tpu.memory_space<vmem>>, %arg4: memref<4x8x32xbf16, #tpu.memory_space<vmem>>, %arg5: memref<1x32xf32, #tpu.memory_space<vmem>>, %arg6: memref<1x4x8x8xf32, #tpu.memory_space<vmem>>, %arg7: memref<1x8x32xf32, #tpu.memory_space<vmem>>) attributes {dimension_semantics = [#tpu.dimension_semantics<parallel>], iteration_bounds = array<i64: 2>, scalar_prefetch = 0 : i64, scratch_operands = 0 : i64, tpu.core_type = #tpu.core_type<tc>, window_params = [{transform_indices = @transform_0, window_bounds = array<i64: 1, 8, 32>}, {pipeline_mode = #tpu.pipeline_mode<synchronous>, transform_indices = @transform_1, window_bounds = array<i64: 32, 96>}, {pipeline_mode = #tpu.pipeline_mode<synchronous>, transform_indices = @transform_2, window_bounds = array<i64: 1, 96>}, {pipeline_mode = #tpu.pipeline_mode<synchronous>, transform_indices = @transform_3, window_bounds = array<i64: 4, 8, 32>}, {pipeline_mode = #tpu.pipeline_mode<synchronous>, transform_indices = @transform_4, window_bounds = array<i64: 1, 32>}, {transform_indices = @transform_5, window_bounds = array<i64: 1, 4, 8, 8>}, {transform_indices = @transform_6, window_bounds = array<i64: 1, 8, 32>}]} {
    %c0 = arith.constant 0 : index
    %c0_0 = arith.constant 0 : index
    %c0_1 = arith.constant 0 : index
    %0 = vector.load %arg1[%c0, %c0_0, %c0_1] : memref<1x8x32xbf16, #tpu.memory_space<vmem>>, vector<1x8x32xbf16>
    %1 = vector.shape_cast %0 : vector<1x8x32xbf16> to vector<8x32xbf16>
    %c0_2 = arith.constant 0 : index
    %c0_3 = arith.constant 0 : index
    %2 = vector.load %arg2[%c0_2, %c0_3] : memref<32x96xbf16, #tpu.memory_space<vmem>>, vector<32x96xbf16>
    %cst = arith.constant dense<0.000000e+00> : vector<8x96xf32>
    %3 = tpu.matmul %1, %2, %cst {dimension_numbers = #tpu.dot_dimension_numbers<[1], [0], [0], [1], [0, 0, 1, 1], [], []>} : vector<8x32xbf16>, vector<32x96xbf16>, vector<8x96xf32> -> vector<8x96xf32>
    %c0_4 = arith.constant 0 : index
    %c0_5 = arith.constant 0 : index
    %4 = vector.load %arg3[%c0_4, %c0_5] : memref<1x96xf32, #tpu.memory_space<vmem>>, vector<1x96xf32>
    %5 = vector.broadcast %4 : vector<1x96xf32> to vector<8x96xf32>
    %6 = arith.addf %3, %5 : vector<8x96xf32>
    %7 = arith.truncf %6 : vector<8x96xf32> to vector<8x96xbf16>
    %8 = vector.shape_cast %7 : vector<8x96xbf16> to vector<1x8x96xbf16>
    %cst_6 = arith.constant 0.000000e+00 : f32
    %9 = vector.broadcast %cst_6 : f32 to vector<8x32xf32>
    %10 = vector.extract_strided_slice %8 {offsets = [0, 0, 0], sizes = [1, 8, 8], strides = [1, 1, 1]} : vector<1x8x96xbf16> to vector<1x8x8xbf16>
    %11 = vector.extract_strided_slice %8 {offsets = [0, 0, 32], sizes = [1, 8, 8], strides = [1, 1, 1]} : vector<1x8x96xbf16> to vector<1x8x8xbf16>
    %12 = vector.extract_strided_slice %8 {offsets = [0, 0, 64], sizes = [1, 8, 8], strides = [1, 1, 1]} : vector<1x8x96xbf16> to vector<1x8x8xbf16>
    "tpu.trace_start"() <{level = 10 : i32, message = "bqd,bkd->bqk"}> : () -> ()
    %cst_7 = arith.constant dense<0.000000e+00> : vector<1x8x8xf32>
    %13 = tpu.matmul %10, %11, %cst_7 {dimension_numbers = #tpu.dot_dimension_numbers<[2], [2], [1], [1], [0, 0, 0, 1, 1, 1], [0], [0]>} : vector<1x8x8xbf16>, vector<1x8x8xbf16>, vector<1x8x8xf32> -> vector<1x8x8xf32>
    "tpu.trace_stop"() : () -> ()
    %cst_8 = arith.constant dense<0xFF800000> : vector<1x8xf32>
    %14 = vector.multi_reduction <maximumf>, %13, %cst_8 [2] : vector<1x8x8xf32> to vector<1x8xf32>
    %15 = vector.shape_cast %14 : vector<1x8xf32> to vector<1x8x1xf32>
    %16 = vector.broadcast %15 : vector<1x8x1xf32> to vector<1x8x8xf32>
    %17 = arith.subf %13, %16 : vector<1x8x8xf32>
    %18 = math.exp %17 : vector<1x8x8xf32>
    %cst_9 = arith.constant dense<0.000000e+00> : vector<1x8xf32>
    %19 = vector.multi_reduction <add>, %18, %cst_9 [2] : vector<1x8x8xf32> to vector<1x8xf32>
    %20 = vector.shape_cast %19 : vector<1x8xf32> to vector<1x8x1xf32>
    %cst_10 = arith.constant 1.000000e+00 : f32
    %21 = vector.broadcast %cst_10 : f32 to vector<1x8x1xf32>
    %22 = arith.divf %21, %20 : vector<1x8x1xf32>
    %23 = vector.broadcast %22 : vector<1x8x1xf32> to vector<1x8x8xf32>
    %24 = arith.mulf %18, %23 : vector<1x8x8xf32>
    %25 = arith.truncf %24 : vector<1x8x8xf32> to vector<1x8x8xbf16>
    %c0_11 = arith.constant 0 : index
    %c0_12 = arith.constant 0 : index
    %c0_13 = arith.constant 0 : index
    %c0_14 = arith.constant 0 : index
    %26 = vector.load %arg6[%c0_11, %c0_12, %c0_13, %c0_14] : memref<1x4x8x8xf32, #tpu.memory_space<vmem>>, vector<1x1x8x8xf32>
    %27 = vector.shape_cast %26 : vector<1x1x8x8xf32> to vector<1x8x8xf32>
    %28 = vector.shape_cast %24 : vector<1x8x8xf32> to vector<1x1x8x8xf32>
    tpu.vector_store %arg6[%c0_11, %c0_12, %c0_13, %c0_14], %28 {strides = array<i32>} : memref<1x4x8x8xf32, #tpu.memory_space<vmem>>, vector<1x1x8x8xf32>,
    "tpu.trace_start"() <{level = 10 : i32, message = "bqk,bkd->bqd"}> : () -> ()
    %cst_15 = arith.constant dense<0.000000e+00> : vector<1x8x8xf32>
    %29 = tpu.matmul %25, %12, %cst_15 {dimension_numbers = #tpu.dot_dimension_numbers<[2], [1], [1], [2], [0, 0, 0, 1, 1, 2], [0], [0]>} : vector<1x8x8xbf16>, vector<1x8x8xbf16>, vector<1x8x8xf32> -> vector<1x8x8xf32>
    "tpu.trace_stop"() : () -> ()
    %30 = vector.shape_cast %29 : vector<1x8x8xf32> to vector<8x8xf32>
    %31 = arith.truncf %30 : vector<8x8xf32> to vector<8x8xbf16>
    %c0_16 = arith.constant 0 : index
    %c0_17 = arith.constant 0 : index
    %c0_18 = arith.constant 0 : index
    %32 = vector.load %arg4[%c0_16, %c0_17, %c0_18] : memref<4x8x32xbf16, #tpu.memory_space<vmem>>, vector<1x8x32xbf16>
    %33 = vector.shape_cast %32 : vector<1x8x32xbf16> to vector<8x32xbf16>
    %cst_19 = arith.constant dense<0.000000e+00> : vector<8x32xf32>
    %34 = tpu.matmul %31, %33, %cst_19 {dimension_numbers = #tpu.dot_dimension_numbers<[1], [0], [0], [1], [0, 0, 1, 1], [], []>} : vector<8x8xbf16>, vector<8x32xbf16>, vector<8x32xf32> -> vector<8x32xf32>
    %35 = arith.addf %9, %34 : vector<8x32xf32>
    %36 = vector.extract_strided_slice %8 {offsets = [0, 0, 8], sizes = [1, 8, 8], strides = [1, 1, 1]} : vector<1x8x96xbf16> to vector<1x8x8xbf16>
    %37 = vector.extract_strided_slice %8 {offsets = [0, 0, 40], sizes = [1, 8, 8], strides = [1, 1, 1]} : vector<1x8x96xbf16> to vector<1x8x8xbf16>
    %38 = vector.extract_strided_slice %8 {offsets = [0, 0, 72], sizes = [1, 8, 8], strides = [1, 1, 1]} : vector<1x8x96xbf16> to vector<1x8x8xbf16>
    "tpu.trace_start"() <{level = 10 : i32, message = "bqd,bkd->bqk"}> : () -> ()
    %cst_20 = arith.constant dense<0.000000e+00> : vector<1x8x8xf32>
    %39 = tpu.matmul %36, %37, %cst_20 {dimension_numbers = #tpu.dot_dimension_numbers<[2], [2], [1], [1], [0, 0, 0, 1, 1, 1], [0], [0]>} : vector<1x8x8xbf16>, vector<1x8x8xbf16>, vector<1x8x8xf32> -> vector<1x8x8xf32>
    "tpu.trace_stop"() : () -> ()
    %cst_21 = arith.constant dense<0xFF800000> : vector<1x8xf32>
    %40 = vector.multi_reduction <maximumf>, %39, %cst_21 [2] : vector<1x8x8xf32> to vector<1x8xf32>
    %41 = vector.shape_cast %40 : vector<1x8xf32> to vector<1x8x1xf32>
    %42 = vector.broadcast %41 : vector<1x8x1xf32> to vector<1x8x8xf32>
    %43 = arith.subf %39, %42 : vector<1x8x8xf32>
    %44 = math.exp %43 : vector<1x8x8xf32>
    %cst_22 = arith.constant dense<0.000000e+00> : vector<1x8xf32>
    %45 = vector.multi_reduction <add>, %44, %cst_22 [2] : vector<1x8x8xf32> to vector<1x8xf32>
    %46 = vector.shape_cast %45 : vector<1x8xf32> to vector<1x8x1xf32>
    %cst_23 = arith.constant 1.000000e+00 : f32
    %47 = vector.broadcast %cst_23 : f32 to vector<1x8x1xf32>
    %48 = arith.divf %47, %46 : vector<1x8x1xf32>
    %49 = vector.broadcast %48 : vector<1x8x1xf32> to vector<1x8x8xf32>
    %50 = arith.mulf %44, %49 : vector<1x8x8xf32>
    %51 = arith.truncf %50 : vector<1x8x8xf32> to vector<1x8x8xbf16>
    %c0_24 = arith.constant 0 : index
    %c1 = arith.constant 1 : index
    %c0_25 = arith.constant 0 : index
    %c0_26 = arith.constant 0 : index
    %52 = vector.load %arg6[%c0_24, %c1, %c0_25, %c0_26] : memref<1x4x8x8xf32, #tpu.memory_space<vmem>>, vector<1x1x8x8xf32>
    %53 = vector.shape_cast %52 : vector<1x1x8x8xf32> to vector<1x8x8xf32>
    %54 = vector.shape_cast %50 : vector<1x8x8xf32> to vector<1x1x8x8xf32>
    tpu.vector_store %arg6[%c0_24, %c1, %c0_25, %c0_26], %54 {strides = array<i32>} : memref<1x4x8x8xf32, #tpu.memory_space<vmem>>, vector<1x1x8x8xf32>,
    "tpu.trace_start"() <{level = 10 : i32, message = "bqk,bkd->bqd"}> : () -> ()
    %cst_27 = arith.constant dense<0.000000e+00> : vector<1x8x8xf32>
    %55 = tpu.matmul %51, %38, %cst_27 {dimension_numbers = #tpu.dot_dimension_numbers<[2], [1], [1], [2], [0, 0, 0, 1, 1, 2], [0], [0]>} : vector<1x8x8xbf16>, vector<1x8x8xbf16>, vector<1x8x8xf32> -> vector<1x8x8xf32>
    "tpu.trace_stop"() : () -> ()
    %56 = vector.shape_cast %55 : vector<1x8x8xf32> to vector<8x8xf32>
    %57 = arith.truncf %56 : vector<8x8xf32> to vector<8x8xbf16>
    %c1_28 = arith.constant 1 : index
    %c0_29 = arith.constant 0 : index
    %c0_30 = arith.constant 0 : index
    %58 = vector.load %arg4[%c1_28, %c0_29, %c0_30] : memref<4x8x32xbf16, #tpu.memory_space<vmem>>, vector<1x8x32xbf16>
    %59 = vector.shape_cast %58 : vector<1x8x32xbf16> to vector<8x32xbf16>
    %cst_31 = arith.constant dense<0.000000e+00> : vector<8x32xf32>
    %60 = tpu.matmul %57, %59, %cst_31 {dimension_numbers = #tpu.dot_dimension_numbers<[1], [0], [0], [1], [0, 0, 1, 1], [], []>} : vector<8x8xbf16>, vector<8x32xbf16>, vector<8x32xf32> -> vector<8x32xf32>
    %61 = arith.addf %35, %60 : vector<8x32xf32>
    %62 = vector.extract_strided_slice %8 {offsets = [0, 0, 16], sizes = [1, 8, 8], strides = [1, 1, 1]} : vector<1x8x96xbf16> to vector<1x8x8xbf16>
    %63 = vector.extract_strided_slice %8 {offsets = [0, 0, 48], sizes = [1, 8, 8], strides = [1, 1, 1]} : vector<1x8x96xbf16> to vector<1x8x8xbf16>
    %64 = vector.extract_strided_slice %8 {offsets = [0, 0, 80], sizes = [1, 8, 8], strides = [1, 1, 1]} : vector<1x8x96xbf16> to vector<1x8x8xbf16>
    "tpu.trace_start"() <{level = 10 : i32, message = "bqd,bkd->bqk"}> : () -> ()
    %cst_32 = arith.constant dense<0.000000e+00> : vector<1x8x8xf32>
    %65 = tpu.matmul %62, %63, %cst_32 {dimension_numbers = #tpu.dot_dimension_numbers<[2], [2], [1], [1], [0, 0, 0, 1, 1, 1], [0], [0]>} : vector<1x8x8xbf16>, vector<1x8x8xbf16>, vector<1x8x8xf32> -> vector<1x8x8xf32>
    "tpu.trace_stop"() : () -> ()
    %cst_33 = arith.constant dense<0xFF800000> : vector<1x8xf32>
    %66 = vector.multi_reduction <maximumf>, %65, %cst_33 [2] : vector<1x8x8xf32> to vector<1x8xf32>
    %67 = vector.shape_cast %66 : vector<1x8xf32> to vector<1x8x1xf32>
    %68 = vector.broadcast %67 : vector<1x8x1xf32> to vector<1x8x8xf32>
    %69 = arith.subf %65, %68 : vector<1x8x8xf32>
    %70 = math.exp %69 : vector<1x8x8xf32>
    %cst_34 = arith.constant dense<0.000000e+00> : vector<1x8xf32>
    %71 = vector.multi_reduction <add>, %70, %cst_34 [2] : vector<1x8x8xf32> to vector<1x8xf32>
    %72 = vector.shape_cast %71 : vector<1x8xf32> to vector<1x8x1xf32>
    %cst_35 = arith.constant 1.000000e+00 : f32
    %73 = vector.broadcast %cst_35 : f32 to vector<1x8x1xf32>
    %74 = arith.divf %73, %72 : vector<1x8x1xf32>
    %75 = vector.broadcast %74 : vector<1x8x1xf32> to vector<1x8x8xf32>
    %76 = arith.mulf %70, %75 : vector<1x8x8xf32>
    %77 = arith.truncf %76 : vector<1x8x8xf32> to vector<1x8x8xbf16>
    %c0_36 = arith.constant 0 : index
    %c2 = arith.constant 2 : index
    %c0_37 = arith.constant 0 : index
    %c0_38 = arith.constant 0 : index
    %78 = vector.load %arg6[%c0_36, %c2, %c0_37, %c0_38] : memref<1x4x8x8xf32, #tpu.memory_space<vmem>>, vector<1x1x8x8xf32>
    %79 = vector.shape_cast %78 : vector<1x1x8x8xf32> to vector<1x8x8xf32>
    %80 = vector.shape_cast %76 : vector<1x8x8xf32> to vector<1x1x8x8xf32>
    tpu.vector_store %arg6[%c0_36, %c2, %c0_37, %c0_38], %80 {strides = array<i32>} : memref<1x4x8x8xf32, #tpu.memory_space<vmem>>, vector<1x1x8x8xf32>,
    "tpu.trace_start"() <{level = 10 : i32, message = "bqk,bkd->bqd"}> : () -> ()
    %cst_39 = arith.constant dense<0.000000e+00> : vector<1x8x8xf32>
    %81 = tpu.matmul %77, %64, %cst_39 {dimension_numbers = #tpu.dot_dimension_numbers<[2], [1], [1], [2], [0, 0, 0, 1, 1, 2], [0], [0]>} : vector<1x8x8xbf16>, vector<1x8x8xbf16>, vector<1x8x8xf32> -> vector<1x8x8xf32>
    "tpu.trace_stop"() : () -> ()
    %82 = vector.shape_cast %81 : vector<1x8x8xf32> to vector<8x8xf32>
    %83 = arith.truncf %82 : vector<8x8xf32> to vector<8x8xbf16>
    %c2_40 = arith.constant 2 : index
    %c0_41 = arith.constant 0 : index
    %c0_42 = arith.constant 0 : index
    %84 = vector.load %arg4[%c2_40, %c0_41, %c0_42] : memref<4x8x32xbf16, #tpu.memory_space<vmem>>, vector<1x8x32xbf16>
    %85 = vector.shape_cast %84 : vector<1x8x32xbf16> to vector<8x32xbf16>
    %cst_43 = arith.constant dense<0.000000e+00> : vector<8x32xf32>
    %86 = tpu.matmul %83, %85, %cst_43 {dimension_numbers = #tpu.dot_dimension_numbers<[1], [0], [0], [1], [0, 0, 1, 1], [], []>} : vector<8x8xbf16>, vector<8x32xbf16>, vector<8x32xf32> -> vector<8x32xf32>
    %87 = arith.addf %61, %86 : vector<8x32xf32>
    %88 = vector.extract_strided_slice %8 {offsets = [0, 0, 24], sizes = [1, 8, 8], strides = [1, 1, 1]} : vector<1x8x96xbf16> to vector<1x8x8xbf16>
    %89 = vector.extract_strided_slice %8 {offsets = [0, 0, 56], sizes = [1, 8, 8], strides = [1, 1, 1]} : vector<1x8x96xbf16> to vector<1x8x8xbf16>
    %90 = vector.extract_strided_slice %8 {offsets = [0, 0, 88], sizes = [1, 8, 8], strides = [1, 1, 1]} : vector<1x8x96xbf16> to vector<1x8x8xbf16>
    "tpu.trace_start"() <{level = 10 : i32, message = "bqd,bkd->bqk"}> : () -> ()
    %cst_44 = arith.constant dense<0.000000e+00> : vector<1x8x8xf32>
    %91 = tpu.matmul %88, %89, %cst_44 {dimension_numbers = #tpu.dot_dimension_numbers<[2], [2], [1], [1], [0, 0, 0, 1, 1, 1], [0], [0]>} : vector<1x8x8xbf16>, vector<1x8x8xbf16>, vector<1x8x8xf32> -> vector<1x8x8xf32>
    "tpu.trace_stop"() : () -> ()
    %cst_45 = arith.constant dense<0xFF800000> : vector<1x8xf32>
    %92 = vector.multi_reduction <maximumf>, %91, %cst_45 [2] : vector<1x8x8xf32> to vector<1x8xf32>
    %93 = vector.shape_cast %92 : vector<1x8xf32> to vector<1x8x1xf32>
    %94 = vector.broadcast %93 : vector<1x8x1xf32> to vector<1x8x8xf32>
    %95 = arith.subf %91, %94 : vector<1x8x8xf32>
    %96 = math.exp %95 : vector<1x8x8xf32>
    %cst_46 = arith.constant dense<0.000000e+00> : vector<1x8xf32>
    %97 = vector.multi_reduction <add>, %96, %cst_46 [2] : vector<1x8x8xf32> to vector<1x8xf32>
    %98 = vector.shape_cast %97 : vector<1x8xf32> to vector<1x8x1xf32>
    %cst_47 = arith.constant 1.000000e+00 : f32
    %99 = vector.broadcast %cst_47 : f32 to vector<1x8x1xf32>
    %100 = arith.divf %99, %98 : vector<1x8x1xf32>
    %101 = vector.broadcast %100 : vector<1x8x1xf32> to vector<1x8x8xf32>
    %102 = arith.mulf %96, %101 : vector<1x8x8xf32>
    %103 = arith.truncf %102 : vector<1x8x8xf32> to vector<1x8x8xbf16>
    %c0_48 = arith.constant 0 : index
    %c3 = arith.constant 3 : index
    %c0_49 = arith.constant 0 : index
    %c0_50 = arith.constant 0 : index
    %104 = vector.load %arg6[%c0_48, %c3, %c0_49, %c0_50] : memref<1x4x8x8xf32, #tpu.memory_space<vmem>>, vector<1x1x8x8xf32>
    %105 = vector.shape_cast %104 : vector<1x1x8x8xf32> to vector<1x8x8xf32>
    %106 = vector.shape_cast %102 : vector<1x8x8xf32> to vector<1x1x8x8xf32>
    tpu.vector_store %arg6[%c0_48, %c3, %c0_49, %c0_50], %106 {strides = array<i32>} : memref<1x4x8x8xf32, #tpu.memory_space<vmem>>, vector<1x1x8x8xf32>,
    "tpu.trace_start"() <{level = 10 : i32, message = "bqk,bkd->bqd"}> : () -> ()
    %cst_51 = arith.constant dense<0.000000e+00> : vector<1x8x8xf32>
    %107 = tpu.matmul %103, %90, %cst_51 {dimension_numbers = #tpu.dot_dimension_numbers<[2], [1], [1], [2], [0, 0, 0, 1, 1, 2], [0], [0]>} : vector<1x8x8xbf16>, vector<1x8x8xbf16>, vector<1x8x8xf32> -> vector<1x8x8xf32>
    "tpu.trace_stop"() : () -> ()
    %108 = vector.shape_cast %107 : vector<1x8x8xf32> to vector<8x8xf32>
    %109 = arith.truncf %108 : vector<8x8xf32> to vector<8x8xbf16>
    %c3_52 = arith.constant 3 : index
    %c0_53 = arith.constant 0 : index
    %c0_54 = arith.constant 0 : index
    %110 = vector.load %arg4[%c3_52, %c0_53, %c0_54] : memref<4x8x32xbf16, #tpu.memory_space<vmem>>, vector<1x8x32xbf16>
    %111 = vector.shape_cast %110 : vector<1x8x32xbf16> to vector<8x32xbf16>
    %cst_55 = arith.constant dense<0.000000e+00> : vector<8x32xf32>
    %112 = tpu.matmul %109, %111, %cst_55 {dimension_numbers = #tpu.dot_dimension_numbers<[1], [0], [0], [1], [0, 0, 1, 1], [], []>} : vector<8x8xbf16>, vector<8x32xbf16>, vector<8x32xf32> -> vector<8x32xf32>
    %113 = arith.addf %87, %112 : vector<8x32xf32>
    %c0_56 = arith.constant 0 : index
    %c0_57 = arith.constant 0 : index
    %114 = vector.load %arg5[%c0_56, %c0_57] : memref<1x32xf32, #tpu.memory_space<vmem>>, vector<1x32xf32>
    %115 = vector.broadcast %114 : vector<1x32xf32> to vector<8x32xf32>
    %116 = arith.addf %113, %115 : vector<8x32xf32>
    %117 = vector.shape_cast %116 : vector<8x32xf32> to vector<1x8x32xf32>
    %c0_58 = arith.constant 0 : index
    %c0_59 = arith.constant 0 : index
    %c0_60 = arith.constant 0 : index
    %118 = vector.load %arg7[%c0_58, %c0_59, %c0_60] : memref<1x8x32xf32, #tpu.memory_space<vmem>>, vector<1x8x32xf32>
    tpu.vector_store %arg7[%c0_58, %c0_59, %c0_60], %117 {strides = array<i32>} : memref<1x8x32xf32, #tpu.memory_space<vmem>>, vector<1x8x32xf32>,
    return
  }
  func.func @transform_0(%arg0: i32) -> (i32, i32, i32) {
    %c0_i32 = arith.constant 0 : i32
    %c0_i32_0 = arith.constant 0 : i32
    %c0_i32_1 = arith.constant 0 : i32
    return %arg0, %c0_i32, %c0_i32_0 : i32, i32, i32
  }
  func.func @transform_1(%arg0: i32) -> (i32, i32) {
    %c0_i32 = arith.constant 0 : i32
    %c0_i32_0 = arith.constant 0 : i32
    %c0_i32_1 = arith.constant 0 : i32
    return %c0_i32, %c0_i32_0 : i32, i32
  }
  func.func @transform_2(%arg0: i32) -> (i32, i32) {
    %c0_i32 = arith.constant 0 : i32
    %c0_i32_0 = arith.constant 0 : i32
    %c0_i32_1 = arith.constant 0 : i32
    return %c0_i32, %c0_i32_0 : i32, i32
  }
  func.func @transform_3(%arg0: i32) -> (i32, i32, i32) {
    %c0_i32 = arith.constant 0 : i32
    %c0_i32_0 = arith.constant 0 : i32
    %c0_i32_1 = arith.constant 0 : i32
    %c0_i32_2 = arith.constant 0 : i32
    return %c0_i32, %c0_i32_0, %c0_i32_1 : i32, i32, i32
  }
  func.func @transform_4(%arg0: i32) -> (i32, i32) {
    %c0_i32 = arith.constant 0 : i32
    %c0_i32_0 = arith.constant 0 : i32
    %c0_i32_1 = arith.constant 0 : i32
    return %c0_i32, %c0_i32_0 : i32, i32
  }
  func.func @transform_5(%arg0: i32) -> (i32, i32, i32, i32) {
    %c0_i32 = arith.constant 0 : i32
    %c0_i32_0 = arith.constant 0 : i32
    %c0_i32_1 = arith.constant 0 : i32
    %c0_i32_2 = arith.constant 0 : i32
    return %arg0, %c0_i32, %c0_i32_0, %c0_i32_1 : i32, i32, i32, i32
  }
  func.func @transform_6(%arg0: i32) -> (i32, i32, i32) {
    %c0_i32 = arith.constant 0 : i32
    %c0_i32_0 = arith.constant 0 : i32
    %c0_i32_1 = arith.constant 0 : i32
    return %arg0, %c0_i32, %c0_i32_0 : i32, i32, i32
  }
}

</mosaic_0001>

<bundles_post_ra>
// kernel: tpu_custom_call.1
= control target key start
LH: loop header
LB: loop body
LE: loop exit
PB: predicated region body
PF: predicated region fallthrough
CT: control target
= control target key end

     0   :  { %s2001_s0 = inlined_call_operand.hbm [shape: bf16[2,8,32], index: 0, kind: input, shape index: {}]   ;;  %s2002_s1 = inlined_call_operand.hbm [shape: bf16[32,96], index: 1, kind: input, shape index: {}]   ;;  %s2003_s2 = inlined_call_operand.vmem [shape: f32[1,96], index: 2, kind: input, shape index: {}]   ;;  %s2004_s3 = inlined_call_operand.hbm [shape: bf16[4,8,32], index: 3, kind: input, shape index: {}]   ;;  %s2005_s4 = inlined_call_operand.vmem [shape: f32[1,32], index: 4, kind: input, shape index: {}]   ;;  %s2006_s5 = inlined_call_operand.hbm [shape: f32[2,4,8,8], index: 5, kind: output, shape index: {0}]   ;;  %s2007_s6 = inlined_call_operand.hbm [shape: f32[2,8,32], index: 6, kind: output, shape index: {1}]  }
   0x1   :  { %2012 = sst [smem:[#allocation15_spill]] %s2002_s1 }
   0x2   :  { %12 = vsyncpa [#allocation3], 0 }
   0x3   :  { %14 = vsyncpa [#allocation3 + $0x1], 0 }
   0x4   :  { %15 = vsyncpa [#allocation6], 0 }
   0x5   :  { %16 = vsyncpa [#allocation4], 0 }
   0x6   :  { %18 = vsyncpa [#allocation4 + $0x1], 0 }
   0x7   :  { %19 = vsyncpa [#allocation10], 0 }
   0x8   :  { %21 = vsyncpa [#allocation10 + $0x1], 0  ;;  %s1683_s21 = smov 0   ;;  %s1685_s22 = smov 0  }
   0x9   :  { %s1687_s23 = smov 0   ;;  %s1689_s24 = smov 0  }
   0xa LB: > { %s1704_s25 = sadd.s32 4294967295, %s1624_s24   ;;  %s1191_s26 = sadd.s32 4294967294, %s1624_s24   ;;  %s1624_s24 = sphi %s1689_s24, %s2031_s24   ;;  %s1620_s23 = sphi %s1687_s23, %s2030_s23   ;;  %s1616_s22 = sphi %s1685_s22, %s2029_s22   ;;  %s1612_s21 = sphi %s1683_s21, %s2028_s21  }
   0xb   : > { %p47_p0 = scmp.ne.s32.totalorder %s1616_s22, %s1612_s21  ;;  %p2008_p1 = scmp.eq.s32.totalorder %s1704_s25, 0 }
   0xc   : > { %p161_p3 = scmp.eq.s32.totalorder %s1191_s26, 1  ;;  %p1192_p5 = scmp.ge.s32.totalorder %s1624_s24, 1 }
   0xd   : > { %p1713_p4 = por %p2008_p1, %p47_p0  ;;  %p194_p7 = scmp.lt.s32.totalorder %s1624_s24, 3 }
   0xe   : > { %p1718_p6 = por %p161_p3, %p47_p0  ;;  %s1626_s30 = smov [#allocation5]  }
   0xf   : > { %s2013_s27 = scalar_select %p1713_p4, 1, 0 }
  0x10   : > { %s2014_s28 = scalar_select %p1718_p6, 1, 0 }
  0x11   : > { %p1723_p8 = pnand %p1192_p5, %p194_p7  ;;  %s206_s7 = sshll.u32 %s1626_s30, 4  ;;  %s207_s7 = int_to_ptr.vmem [resolvable:$true] %s206_s7 }
  0x12   : > { %s1627_s9 = smov [#allocation7]   ;;  %s1457_s11 = scalar_lea.vmem %s207_s7, 256 }
  0x13   : > { %s2015_s29 = scalar_select %p1723_p8, 1, 0 }
  0x14   : > { %p1353_p9 = pneg %p1723_p8  ;;  %s222_s10 = sshll.u32 %s1627_s9, 4  ;;  %s223_s10 = int_to_ptr.vmem [resolvable:$true] %s222_s10 }
  0x15   : > { %p1458_p13 = scmp.ne.s32.totalorder %s207_s7, %s1457_s11  ;;  %p1465_p5 = scmp.lt.s32.totalorder %s207_s7, %s207_s7 }
  0x16   : > { %p1732_p11 = pnand %p1353_p9, %p2008_p1  ;;  %p1466_p7 = scmp.lt.s32.totalorder %s1457_s11, %s1457_s11 }
  0x18   : > { %p1448_p12 = pneg %p1732_p11  ;;  %p1467_p10 = por %p1466_p7, %p1465_p5 }
  0x1a   : > { %p1460_p0 = pnand %p1458_p13, %p1448_p12 }
  0x1c   : > { %p1461_p3 = pneg %p1460_p0 }
  0x1e   : > { %p1468_p9 = pnand %p1467_p10, %p1461_p3 }
  0x20   : > { %1471 = shalt.err (!%p1468_p9)
}
  0x21   : > { %s1628_s12 = smov 64   ;;  %s1629_s13 = smov 4  }
  0x22   : > { %s2017_s1 = sld [smem:[#allocation15_spill]]  ;;  %s1483_s16 = scalar_lea.vmem %s223_s10, 256 }
  0x23   : > { %p1484_p1 = scmp.ne.s32.totalorder %s223_s10, %s1483_s16  ;;  %p1491_p2 = scmp.lt.s32.totalorder %s223_s10, %s223_s10 }
  0x24   : > { %p1492_p6 = scmp.lt.s32.totalorder %s1483_s16, %s1483_s16 }
  0x25   : > { %p1486_p13 = pnand %p1484_p1, %p1448_p12 }
  0x26   : > { %p1493_p5 = por %p1492_p6, %p1491_p2 }
  0x27   : > { %p1487_p0 = pneg %p1486_p13 }
  0x28   : > { %1356 = dma.hbm_to_vmem [thread:$0]  (!%p1732_p11), %s2017_s1, 256, %s207_s7, [#allocation6], %s1628_s12, %s1628_s12, %s1629_s13  }
  0x29   : > { %p1494_p10 = pnand %p1493_p5, %p1487_p0 }
  0x2b   : > { %1497 = shalt.err (!%p1494_p10)
}
  0x2c   : > { %1359 = dma.hbm_to_vmem [thread:$0]  (!%p1732_p11), %s2004_s3, 256, %s223_s10, [#allocation6], %s1628_s12, %s1628_s12, %s1629_s13  }
  0x2d   : > { %s1755_s19 = sadd.s32 1, %s1624_s24   ;;  %s34_s20 = sadd.s32 1, %s1620_s23 }
  0x2e   : > { %s31_s26 = ssub.s32 %s1624_s24, %s1755_s19  ;;  %p41_p1 = scmp.ne.s32.totalorder %s1620_s23, %s1616_s22 }
  0x2f   : > { %p32_p2 = scmp.eq.s32.totalorder %s31_s26, 0  ;;  %p42_p6 = scmp.eq.s32.totalorder %s1624_s24, 0 }
  0x30   : > { %p2018_p12 = scmp.eq.s32.totalorder %s1704_s25, 1  ;;  %p1373_p7 = scmp.lt.s32.totalorder %s1624_s24, 2 }
  0x31   : > { %s1771_s7 = scalar_select %p32_p2, %s1620_s23, %s34_s20  }
  0x32   : > { %p1765_p3 = por %p2018_p12, %p41_p1  ;;  %p43_p9 = por %p42_p6, %p41_p1 }
  0x33   : > { %s239_s8 = sand.u32 1, %s1620_s23   ;;  %s1197_s10 = sshll.u32 %s1624_s24, 6 }
  0x34   : > { %s2019_s30 = scalar_select %p1765_p3, 1, 0 }
  0x35   : > { %s1196_s9 = sshll.u32 %s239_s8, 2  ;;  %s1778_s13 = scalar_lea.hbm %s2001_s0, %s1197_s10 }
  0x36   : > { %s243_s14 = scalar_lea.vmem [#allocation2], %s1196_s9  ;;  %p1780_p11 = pnand %p1373_p7, %p43_p9 }
  0x37   : > { %s250_s15 = sshll.u32 %s243_s14, 4  ;;  %s240_s17 = scalar_lea.sflag [#allocation3], %s239_s8  ;;  %s251_s15 = int_to_ptr.vmem [resolvable:$true] %s250_s15 }
  0x38   : > { %s1498_s18 = scalar_lea.hbm %s1778_s13, 64  ;;  %p1500_p0 = pneg %p1780_p11 }
  0x39   : > { %p1499_p13 = scmp.ne.s32.totalorder %s1778_s13, %s1498_s18  ;;  %s1503_s10 = scalar_lea.hbm %s2001_s0, 128 }
  0x3a   : > { %p1504_p1 = scmp.lt.s32.totalorder %s1778_s13, %s2001_s0  ;;  %p1505_p2 = scmp.lt.s32.totalorder %s1503_s10, %s1498_s18 }
  0x3b   : > { %p1501_p5 = pnand %p1500_p0, %p1499_p13 }
  0x3c   : > { %p1506_p6 = por %p1505_p2, %p1504_p1 }
  0x3d   : > { %p1502_p10 = pneg %p1501_p5 }
  0x3f   : > { %p1507_p12 = pnand %p1506_p6, %p1502_p10 }
  0x41   : > { %1510 = shalt.err (!%p1507_p12)
}
  0x42   : > { %s1511_s12 = scalar_lea.vmem %s251_s15, 64  ;;  %s1630_s8 = smov [#allocation2]  }
  0x43   : > { %p1512_p7 = scmp.ne.s32.totalorder %s251_s15, %s1511_s12  ;;  %s1516_s14 = sshll.u32 %s1630_s8, 4  ;;  %s1517_s14 = int_to_ptr.vmem [resolvable:$false] %s1516_s14 }
  0x44   : > { %s1518_s1 = scalar_lea.vmem %s1517_s14, 128  ;;  %p1519_p13 = scmp.lt.s32.totalorder %s251_s15, %s1517_s14 }
  0x45   : > { %p1514_p9 = pnand %p1512_p7, %p1500_p0  ;;  %p1520_p5 = scmp.lt.s32.totalorder %s1518_s1, %s1511_s12 }
  0x47   : > { %p1515_p3 = pneg %p1514_p9  ;;  %p1521_p4 = por %p1520_p5, %p1519_p13 }
  0x49   : > { %p1522_p8 = pnand %p1521_p4, %p1515_p3 }
  0x4b   : > { %1525 = shalt.err (!%p1522_p8)
}
  0x4c   : > { %1363 = dma.hbm_to_vmem [thread:$0]  (!%p1780_p11), %s1778_s13, 64, %s251_s15, %s240_s17  }
  0x4d   : > { %p2021_p10 = scmp.ne.s32.totalorder %s2015_s29, 0 }
  0x4e   : > { %s1801_s18 = sand.u32 (!%p2021_p10), 1, %s1616_s22   ;;  %p2022_p0 = scmp.ne.s32.totalorder (!%p2021_p10), %s2013_s27, 0 }
  0x4f   : > { %259 = sbr.rel (%p2021_p10) target bundleno = 2564 (0xa04), region = 40  ;;  %s1199_s20 = sshll.u32 (!%p2021_p10), %s1801_s18, 2 }
  0x50   : > { %s262_s26 = scalar_lea.sflag (!%p2021_p10), [#allocation3], %s1801_s18  ;;  %s265_s10 = scalar_lea.vmem (!%p2021_p10), [#allocation2], %s1199_s20 }
  0x54   : > { %1595 = dma.done.wait (%p2022_p0), %s262_s26, 64  }
  0x55   : > { %1597 = vsyncadd (%p2022_p0), %s262_s26, 4294967232  ;;  %p2023_p4 = scmp.eq.s32.totalorder %s1704_s25, 0 }
  0x57   : > { %1599 = dma.done.wait (%p2023_p4), [#allocation6], 512   ;;  %p2024_p8 = pmov %p2023_p4 }
  0x58   : > { %v1631_v0 = vmov 0.0   ;;  %vm1632_vm0 = vmmov 0   ;;  %v1428_v1 = vld [vmem:[#allocation5 + $0x8] sm:$0xff]   ;;  %v1429_v2 = vld [vmem:[#allocation5] sm:$0xff]   ;;  %v308_v3 = vld [vmem:[%s265_s10] sm:$0xf] }
  0x59   : > { %1601 = vsyncadd (%p2024_p8), [#allocation6], 4294966784  ;;  %1259 = vmatprep.subr.bf16.mxu0 %v1631_v0  ;;  %1263 = vmatprep.mubr.msk.bf16.mxu0 %vm1632_vm0, %v1631_v0  ;;  %vm332_vm1 = vcmask 261120   ;;  %v1204_v4 = vld [vmem:[%s2003_s2] ss:$0 sm:$0xff]  ;;  %s1633_s29 = smov 120  }
  0x5a   : > { %1267 = vmatprep.subr.bf16.mxu1 %v1631_v0  ;;  %1269 = vmatprep.mubr.msk.bf16.mxu1 %vm1632_vm0, %v1631_v0  ;;  %s1634_s13 = smov 96   ;;  %s1635_s15 = smov 88   ;;  %vm380_vm2 = vcmask 64512   ;;  %vm446_vm3 = vcmask 1043456   ;;  %v491_v48 = vld [vmem:[#allocation7] sm:$0xf] }
  0x5b   : > { %1260 = vmatpush3.bf16.msra.mxu0 %v1428_v1  ;;  %s1636_s16 = smov 64   ;;  %s1637_s17 = smov 56   ;;  %v658_v49 = vsel %vm446_vm3, %v491_v48, 0  ;;  %v607_v50 = vld [vmem:[#allocation7 + $0x4] sm:$0xf] }
  0x5c   : > { %1261 = vmatprep.subr.bf16.mxu0 %v1631_v0  ;;  %s1638_s11 = smov 112   ;;  %s1639_s9 = smov 80   ;;  %v612_v51 = vsel %vm446_vm3, %v607_v50, 0  ;;  %v978_v50 = vld [vmem:[#allocation7 + $0xc] sm:$0xf] }
  0x5d   : > { %s1202_s12 = sshll.u32 %s1801_s18, 5  ;;  %s1640_s14 = smov 72  }
  0x5e   : > { %s1854_s8 = scalar_lea.vmem [#allocation8], %s1202_s12  ;;  %s1641_s20 = smov 104  }
  0x5f   : > { %1262 = vmatpush3.bf16.msra.mxu0 %v1429_v2  ;;  %s1642_s26 = smov 48   ;;  %s1643_s10 = smov 40  }
  0x60   : > { %1273 = vmatprep.subr.bf16.mxu0 %v1631_v0  ;;  %s1231_s1 = sshll.u32 %s1704_s25, 9  ;;  %s1054_s27 = sshll.u32 %s1854_s8, 4  ;;  %s1924_s27 = int_to_ptr.vmem [resolvable:$true] %s1054_s27 }
  0x61   : > { %p2025_p11 = scmp.ne.s32.totalorder %s2019_s30, 0 }
  0x62   : > { %1264 = vmatmul.mubr.msk.bf16.vlgmr.msra.gmra.mxu0 %vm332_vm1, %v308_v3 }
  0x63   : > { %1275 = vmatprep.mubr.msk.bf16.mxu0 %vm1632_vm0, %v1631_v0 }
 0x122   : > { %v370_v5 = vpop.f32.mrf.mxu0 }
 0x123   : > { %v371_v6 = vadd.f32 %v1204_v4, %v370_v5 }
 0x124   : > { %v1265_v7 = vpop.f32.mrf.mxu0 }
 0x125   : > { %v1827_v8 = vpack.c.bf16 %v371_v6, %v371_v6 }
 0x126   : > { %v373_v9 = vpop.f32.mrf.mxu0 }
 0x127   : > { %492 = vrot.lane.b32.xlu1 %v1827_v8, %s1633_s29  ;;  %378 = vrot.lane.b32.xlu0 %v1827_v8, %s1634_s13 }
 0x128   : > { %v1266_v10 = vpop.f32.mrf.mxu0 }
 0x12b   : > { %494 = vrot.lane.b32.xlu0 %v1827_v8, %s1635_s15  ;;  %s1922_s15 = scalar_lea.hbm %s2006_s5, %s1231_s1 }
 0x199   : > { %v379_v11 = vpop.permute.xlu0 %378  ;;  %v493_v15 = vpop.permute.xlu1 %492 }
 0x19a   : > { %v385_v12 = vsel %vm380_vm2, %v379_v11, 0 }
 0x19b   : > { %1268 = vmatpush3.bf16.xpose.msra.mxu1 %v385_v12 }
 0x19c   : > { %1279 = vmatprep.subr.bf16.mxu1 %v1631_v0 }
 0x19d   : > { %v495_v13 = vpop.permute.xlu0 %494 }
 0x19e   : > { %v500_v14 = vsel %vm380_vm2, %v495_v13, 0 }
 0x1a2   : > { %1270 = vmatmul.mubr.msk.bf16.vlgmr.msra.gmra.mxu1 %vm380_vm2, %v1827_v8 }
 0x1a3   : > { %1280 = vmatpush3.bf16.xpose.msra.mxu1 %v500_v14  ;;  %1281 = vmatprep.mubr.msk.bf16.mxu1 %vm1632_vm0, %v1631_v0 }
 0x1a4   : > { %1291 = vmatprep.subr.bf16.mxu1 %v1631_v0 }
 0x1aa   : > { %1282 = vmatmul.mubr.msk.bf16.vlgmr.msra.gmra.mxu1 %vm380_vm2, %v493_v15 }
 0x1ab   : > { %1293 = vmatprep.mubr.msk.bf16.mxu1 %vm1632_vm0, %v1631_v0  ;;  %1292 = vmatpush3.bf16.msra.mxu1 %v612_v51 }
 0x1ac   : > { %1303 = vmatprep.subr.bf16.mxu1 %v1631_v0 }
 0x262   : > { %v421_v16 = vpop.f32.mrf.mxu1 }
 0x263   : > { %v427_v17 = vsel %vm380_vm2, %v421_v16, -inf }
 0x264   : > { %428 = vmax.xlane.f32.xlu1 %v427_v17  ;;  %v1271_v18 = vpop.f32.mrf.mxu1 }
 0x266   : > { %v424_v19 = vpop.f32.mrf.mxu1 }
 0x268   : > { %v1272_v20 = vpop.f32.mrf.mxu1 }
 0x26a   : > { %v536_v21 = vpop.f32.mrf.mxu1 }
 0x26b   : > { %v542_v22 = vsel %vm380_vm2, %v536_v21, -inf }
 0x26c   : > { %543 = vmax.xlane.f32.xlu0 %v542_v22  ;;  %v1283_v23 = vpop.f32.mrf.mxu1 }
 0x26e   : > { %v539_v24 = vpop.f32.mrf.mxu1 }
 0x270   : > { %v1284_v25 = vpop.f32.mrf.mxu1 }
 0x2ed   : > { %v429_v26 = vpop.xlane.xlu1 %428 }
 0x2ee   : > { %v430_v27 = vsub.f32 %v421_v16, %v429_v26 }
 0x2f0   : > { %v431_v28 = vmul.f32 1.442695, %v430_v27 }
 0x2f2   : > { %1430 = vpow2.f32 %v431_v28 }
 0x2f5   : > { %v544_v29 = vpop.xlane.xlu0 %543 }
 0x2f6   : > { %v545_v30 = vsub.f32 %v536_v21, %v544_v29 }
 0x2f8   : > { %v546_v31 = vmul.f32 1.442695, %v545_v30 }
 0x2fa   : > { %1432 = vpow2.f32 %v546_v31  ;;  %v815_v31 = vld [vmem:[#allocation7 + $0x8] sm:$0xf] }
 0x2ff   : > { %v1431_v32 = vpop.eup %1430 }
 0x300   : > { %v433_v33 = vsel %vm380_vm2, %v1431_v32, 0.0 }
 0x301   : > { %434 = vadd.xlane.f32.xlu0 %v433_v33 }
 0x307   : > { %v1433_v34 = vpop.eup %1432 }
 0x308   : > { %v548_v35 = vsel %vm380_vm2, %v1433_v34, 0.0 }
 0x309   : > { %549 = vadd.xlane.f32.xlu1 %v548_v35 }
 0x317   : > { %441 = vrot.lane.b32.xlu0 %v1827_v8, %s1636_s16  ;;  %s1036_s16 = scalar_lea.sflag [#allocation4], %s1801_s18 }
 0x31a   : > { %557 = vrot.lane.b32.xlu1 %v1827_v8, %s1637_s17  ;;  %s1526_s17 = scalar_lea.vmem %s1924_s27, 512 }
 0x31b   : > { %700 = vrot.lane.b32.xlu0 %v1827_v8, %s1638_s11  ;;  %p1527_p3 = scmp.ne.s32.totalorder %s1924_s27, %s1526_s17  ;;  %s1644_s11 = smov [#allocation8]  }
 0x31d   : > { %p1528_p1 = pnand %p1527_p3, %p2025_p11 }
 0x31e   : > { %702 = vrot.lane.b32.xlu1 %v1827_v8, %s1639_s9  ;;  %s1530_s9 = sshll.u32 %s1644_s11, 4  ;;  %s1531_s9 = int_to_ptr.vmem [resolvable:$false] %s1530_s9 }
 0x31f   : > { %p1529_p2 = pneg %p1528_p1  ;;  %s1532_s12 = scalar_lea.vmem %s1531_s9, 1024 }
 0x320   : > { %p1533_p6 = scmp.lt.s32.totalorder %s1924_s27, %s1531_s9  ;;  %p1534_p12 = scmp.lt.s32.totalorder %s1532_s12, %s1526_s17 }
 0x322   : > { %p1535_p7 = por %p1534_p12, %p1533_p6 }
 0x324   : > { %p1536_p9 = pnand %p1535_p7, %p1529_p2 }
 0x38a   : > { %v435_v36 = vpop.xlane.xlu0 %434 }
 0x38b   : > { %1434 = vrcp.f32 %v435_v36 }
 0x38e   : > { %v442_v37 = vpop.permute.xlu0 %441 }
 0x38f   : > { %v448_v38 = vsel %vm446_vm3, %v442_v37, 0 }
 0x390   : > { %1274 = vmatpush3.bf16.msra.mxu0 %v448_v38 }
 0x391   : > { %1285 = vmatprep.subr.bf16.mxu0 %v1631_v0 }
 0x392   : > { %v550_v39 = vpop.xlane.xlu1 %549  ;;  %v701_v1 = vpop.permute.xlu0 %700 }
 0x393   : > { %1436 = vrcp.f32 %v550_v39 }
 0x396   : > { %v558_v42 = vpop.permute.xlu1 %557 }
 0x397   : > { %v563_v44 = vsel %vm446_vm3, %v558_v42, 0 }
 0x398   : > { %v1435_v40 = vpop.eup %1434 }
 0x399   : > { %v438_v41 = vmul.f32 %v1435_v40, %v1431_v32  ;;  %v820_v32 = vsel %vm446_vm3, %v815_v31, 0 }
 0x39a   : > { %v703_v57 = vpop.permute.xlu1 %702 }
 0x39b   : > { %v439_v43 = vpack.c.bf16 %v438_v41, %v438_v41  ;;  %440 = vst.msk [vmem:[%s1854_s8] sm:$0xff] %vm380_vm2, %v438_v41  ;;  %v708_v61 = vsel %vm380_vm2, %v703_v57, 0 }
 0x39d   : > { %1276 = vmatmul.mubr.msk.bf16.vlgmr.msra.gmra.mxu0 %vm380_vm2, %v439_v43 }
 0x39e   : > { %1286 = vmatpush3.bf16.msra.mxu0 %v563_v44  ;;  %1287 = vmatprep.mubr.msk.bf16.mxu0 %vm1632_vm0, %v1631_v0 }
 0x39f   : > { %1297 = vmatprep.subr.bf16.mxu0 %v1631_v0 }
 0x3a0   : > { %v1437_v45 = vpop.eup %1436 }
 0x3a1   : > { %v553_v46 = vmul.f32 %v1437_v45, %v1433_v34 }
 0x3a3   : > { %v554_v47 = vpack.c.bf16 %v553_v46, %v553_v46  ;;  %1211 = vst.msk [vmem:[%s1854_s8 + $0x8] sm:$0xff] %vm380_vm2, %v553_v46 }
 0x3a5   : > { %1288 = vmatmul.mubr.msk.bf16.vlgmr.msra.gmra.mxu0 %vm380_vm2, %v554_v47 }
 0x3a6   : > { %1299 = vmatprep.mubr.msk.bf16.mxu0 %vm1632_vm0, %v1631_v0  ;;  %1298 = vmatpush3.bf16.msra.mxu0 %v658_v49 }
 0x3a7   : > { %1309 = vmatprep.subr.bf16.mxu0 %v1631_v0 }
 0x45d   : > { %v484_v52 = vpop.f32.mrf.mxu0 }
 0x45e   : > { %v490_v53 = vpack.c.bf16 %v484_v52, %v484_v52  ;;  %v983_v52 = vsel %vm446_vm3, %v978_v50, 0 }
 0x45f   : > { %v1277_v54 = vpop.f32.mrf.mxu0 }
 0x460   : > { %1300 = vmatmul.mubr.msk.bf16.vlgmr.msra.gmra.mxu0 %vm380_vm2, %v490_v53 }
 0x461   : > { %v487_v55 = vpop.f32.mrf.mxu0  ;;  %1311 = vmatprep.mubr.msk.bf16.mxu0 %vm1632_vm0, %v1631_v0 }
 0x463   : > { %v1278_v56 = vpop.f32.mrf.mxu0 }
 0x465   : > { %v599_v58 = vpop.f32.mrf.mxu0 }
 0x466   : > { %v605_v59 = vpack.c.bf16 %v599_v58, %v599_v58 }
 0x467   : > { %v1289_v60 = vpop.f32.mrf.mxu0 }
 0x468   : > { %1294 = vmatmul.mubr.msk.bf16.vlgmr.msra.gmra.mxu1 %vm380_vm2, %v605_v59 }
 0x469   : > { %1304 = vmatpush3.bf16.xpose.msra.mxu1 %v708_v61  ;;  %v602_v62 = vpop.f32.mrf.mxu0  ;;  %1305 = vmatprep.mubr.msk.bf16.mxu1 %vm1632_vm0, %v1631_v0 }
 0x46a   : > { %1315 = vmatprep.subr.bf16.mxu1 %v1631_v0 }
 0x46b   : > { %v1290_v63 = vpop.f32.mrf.mxu0 }
 0x470   : > { %1306 = vmatmul.mubr.msk.bf16.vlgmr.msra.gmra.mxu1 %vm380_vm2, %v701_v1 }
 0x471   : > { %1317 = vmatprep.mubr.msk.bf16.mxu1 %vm1632_vm0, %v1631_v0  ;;  %1316 = vmatpush3.bf16.msra.mxu1 %v820_v32 }
 0x472   : > { %1327 = vmatprep.subr.bf16.mxu1 %v1631_v0 }
 0x520   : > { %v694_v2 = vpop.f32.mrf.mxu0 }
 0x522   : > { %v1301_v3 = vpop.f32.mrf.mxu0 }
 0x524   : > { %v697_v4 = vpop.f32.mrf.mxu0 }
 0x526   : > { %v1302_v5 = vpop.f32.mrf.mxu0 }
 0x528   : > { %v648_v6 = vpop.f32.mrf.mxu1 }
 0x529   : > { %v1883_v7 = vadd.f32 %v694_v2, %v648_v6 }
 0x52a   : > { %v1295_v9 = vpop.f32.mrf.mxu1 }
 0x52c   : > { %v651_v10 = vpop.f32.mrf.mxu1 }
 0x52e   : > { %v1296_v11 = vpop.f32.mrf.mxu1 }
 0x530   : > { %v744_v12 = vpop.f32.mrf.mxu1 }
 0x531   : > { %v750_v13 = vsel %vm380_vm2, %v744_v12, -inf }
 0x532   : > { %751 = vmax.xlane.f32.xlu1 %v750_v13  ;;  %v1307_v14 = vpop.f32.mrf.mxu1 }
 0x534   : > { %v747_v15 = vpop.f32.mrf.mxu1 }
 0x536   : > { %v1308_v16 = vpop.f32.mrf.mxu1 }
 0x543   : > { %865 = vrot.lane.b32.xlu1 %v1827_v8, %s1640_s14 }
 0x547   : > { %863 = vrot.lane.b32.xlu1 %v1827_v8, %s1641_s20 }
 0x5bb   : > { %v752_v17 = vpop.xlane.xlu1 %751 }
 0x5bc   : > { %v753_v18 = vsub.f32 %v744_v12, %v752_v17 }
 0x5be   : > { %v754_v19 = vmul.f32 1.442695, %v753_v18 }
 0x5bf   : > { %v866_v27 = vpop.permute.xlu1 %865 }
 0x5c0   : > { %1438 = vpow2.f32 %v754_v19  ;;  %v871_v29 = vsel %vm380_vm2, %v866_v27, 0 }
 0x5c3   : > { %v864_v30 = vpop.permute.xlu1 %863 }
 0x5cd   : > { %v1439_v20 = vpop.eup %1438 }
 0x5ce   : > { %v756_v21 = vsel %vm380_vm2, %v1439_v20, 0.0 }
 0x5cf   : > { %757 = vadd.xlane.f32.xlu0 %v756_v21 }
 0x5e5   : > { %765 = vrot.lane.b32.xlu0 %v1827_v8, %s1642_s26 }
 0x658   : > { %v758_v22 = vpop.xlane.xlu0 %757 }
 0x659   : > { %1440 = vrcp.f32 %v758_v22 }
 0x65c   : > { %v766_v23 = vpop.permute.xlu0 %765 }
 0x65d   : > { %v771_v24 = vsel %vm446_vm3, %v766_v23, 0 }
 0x65e   : > { %1310 = vmatpush3.bf16.msra.mxu0 %v771_v24 }
 0x65f   : > { %1321 = vmatprep.subr.bf16.mxu0 %v1631_v0 }
 0x666   : > { %v1441_v25 = vpop.eup %1440 }
 0x667   : > { %v761_v26 = vmul.f32 %v1441_v25, %v1439_v20 }
 0x669   : > { %v762_v28 = vpack.c.bf16 %v761_v26, %v761_v26  ;;  %1216 = vst.msk [vmem:[%s1854_s8 + $0x10] sm:$0xff] %vm380_vm2, %v761_v26 }
 0x66b   : > { %1312 = vmatmul.mubr.msk.bf16.vlgmr.msra.gmra.mxu0 %vm380_vm2, %v762_v28 }
 0x66c   : > { %1322 = vmatpush3.bf16.xpose.msra.mxu0 %v871_v29  ;;  %1323 = vmatprep.mubr.msk.bf16.mxu0 %vm1632_vm0, %v1631_v0 }
 0x66d   : > { %1333 = vmatprep.subr.bf16.mxu0 %v1631_v0 }
 0x673   : > { %1324 = vmatmul.mubr.msk.bf16.vlgmr.msra.gmra.mxu0 %vm380_vm2, %v864_v30 }
 0x674   : > { %1335 = vmatprep.mubr.msk.bf16.mxu0 %vm1632_vm0, %v1631_v0  ;;  %1334 = vmatpush3.bf16.msra.mxu0 %v983_v52 }
 0x72b   : > { %v807_v33 = vpop.f32.mrf.mxu0 }
 0x72c   : > { %v813_v34 = vpack.c.bf16 %v807_v33, %v807_v33 }
 0x72d   : > { %v1313_v35 = vpop.f32.mrf.mxu0 }
 0x72e   : > { %1318 = vmatmul.mubr.msk.bf16.vlgmr.msra.gmra.mxu1 %vm380_vm2, %v813_v34 }
 0x72f   : > { %v810_v36 = vpop.f32.mrf.mxu0  ;;  %1329 = vmatprep.mubr.msk.bf16.mxu1 %vm1632_vm0, %v1631_v0 }
 0x731   : > { %v1314_v37 = vpop.f32.mrf.mxu0 }
 0x733   : > { %v907_v38 = vpop.f32.mrf.mxu0 }
 0x734   : > { %v913_v39 = vsel %vm380_vm2, %v907_v38, -inf }
 0x735   : > { %914 = vmax.xlane.f32.xlu0 %v913_v39  ;;  %v1325_v40 = vpop.f32.mrf.mxu0 }
 0x737   : > { %v910_v41 = vpop.f32.mrf.mxu0 }
 0x739   : > { %v1326_v42 = vpop.f32.mrf.mxu0 }
 0x74b   : > { %928 = vrot.lane.b32.xlu0 %v1827_v8, %s1643_s10 }
 0x7be   : > { %v915_v43 = vpop.xlane.xlu0 %914 }
 0x7bf   : > { %v916_v44 = vsub.f32 %v907_v38, %v915_v43 }
 0x7c1   : > { %v917_v45 = vmul.f32 1.442695, %v916_v44 }
 0x7c2   : > { %v929_v46 = vpop.permute.xlu0 %928 }
 0x7c3   : > { %1442 = vpow2.f32 %v917_v45  ;;  %v934_v47 = vsel %vm446_vm3, %v929_v46, 0 }
 0x7c4   : > { %1328 = vmatpush3.bf16.msra.mxu1 %v934_v47 }
 0x7d0   : > { %v1443_v0 = vpop.eup %1442 }
 0x7d1   : > { %v919_v48 = vsel %vm380_vm2, %v1443_v0, 0.0 }
 0x7d2   : > { %920 = vadd.xlane.f32.xlu1 %v919_v48 }
 0x7ee   : > { %v856_v49 = vpop.f32.mrf.mxu1 }
 0x7ef   : > { %v862_v51 = vadd.f32 %v856_v49, %v1883_v7 }
 0x7f0   : > { %v1319_v8 = vpop.f32.mrf.mxu1 }
 0x7f2   : > { %v859_v53 = vpop.f32.mrf.mxu1 }
 0x7f4   : > { %v1320_v54 = vpop.f32.mrf.mxu1 }
 0x85b   : > { %v921_v55 = vpop.xlane.xlu1 %920 }
 0x85c   : > { %1444 = vrcp.f32 %v921_v55 }
 0x869   : > { %v1445_v56 = vpop.eup %1444 }
 0x86a   : > { %v924_v57 = vmul.f32 %v1445_v56, %v1443_v0 }
 0x86c   : > { %1220 = vst.msk [vmem:[%s1854_s8 + $0x18] sm:$0xff] %vm380_vm2, %v924_v57  ;;  %v925_v58 = vpack.c.bf16 %v924_v57, %v924_v57 }
 0x86e   : > { %1330 = vmatmul.mubr.msk.bf16.vlgmr.msra.gmra.mxu1 %vm380_vm2, %v925_v58 }
 0x92e   : > { %v970_v59 = vpop.f32.mrf.mxu1 }
 0x92f   : > { %v976_v60 = vpack.c.bf16 %v970_v59, %v970_v59 }
 0x930   : > { %v1331_v61 = vpop.f32.mrf.mxu1 }
 0x931   : > { %1336 = vmatmul.mubr.msk.bf16.vlgmr.msra.gmra.mxu0 %vm380_vm2, %v976_v60 }
 0x932   : > { %v973_v62 = vpop.f32.mrf.mxu1 }
 0x934   : > { %v1332_v63 = vpop.f32.mrf.mxu1 }
 0x935   : > { %1539 = shalt.err (!%p1536_p9)
}
 0x936   : > { %s1540_s8 = scalar_lea.hbm %s1922_s15, 512  ;;  %s1544_s26 = scalar_lea.hbm %s2006_s5, 1024 }
 0x937   : > { %p1541_p13 = scmp.ne.s32.totalorder %s1922_s15, %s1540_s8  ;;  %p1545_p0 = scmp.lt.s32.totalorder %s1922_s15, %s2006_s5 }
 0x938   : > { %p1546_p4 = scmp.lt.s32.totalorder %s1544_s26, %s1540_s8 }
 0x939   : > { %p1542_p5 = pnand %p1541_p13, %p2025_p11 }
 0x93a   : > { %p1547_p8 = por %p1546_p4, %p1545_p0 }
 0x93b   : > { %p1543_p10 = pneg %p1542_p5 }
 0x93d   : > { %p1548_p3 = pnand %p1547_p8, %p1543_p10 }
 0x93f   : > { %1551 = shalt.err (!%p1548_p3)
}
 0x940   : > { %s1645_s29 = smov 128   ;;  %s1646_s13 = smov 8   ;;  %v1223_v2 = vld [vmem:[%s2005_s4] ss:$0 sm:$0xff] }
 0x941   : > { %1349 = dma.vmem_to_hbm [thread:$0]  (%p2025_p11), %s1924_s27, 512, %s1922_s15, %s1036_s16, %s1645_s29, %s1645_s29, %s1646_s13  }
 0x942   : > { %s1203_s17 = sshll.u32 %s1801_s18, 3  ;;  %s1228_s12 = sshll.u32 %s1704_s25, 7 }
 0x943   : > { %s306_s8 = scalar_lea.vmem [#allocation9], %s1203_s17  ;;  %s1957_s10 = scalar_lea.hbm %s2007_s6, %s1228_s12 }
 0x944   : > { %s1070_s14 = sshll.u32 %s306_s8, 4  ;;  %s1041_s25 = scalar_lea.sflag [#allocation10], %s1801_s18  ;;  %s1959_s14 = int_to_ptr.vmem [resolvable:$true] %s1070_s14 }
 0x945   : > { %s1552_s27 = scalar_lea.vmem %s1959_s14, 128  ;;  %s1647_s15 = smov [#allocation9]  }
 0x946   : > { %p1553_p1 = scmp.ne.s32.totalorder %s1959_s14, %s1552_s27  ;;  %s1556_s16 = sshll.u32 %s1647_s15, 4  ;;  %s1557_s16 = int_to_ptr.vmem [resolvable:$false] %s1556_s16 }
 0x947   : > { %s1558_s1 = scalar_lea.vmem %s1557_s16, 256  ;;  %p1559_p12 = scmp.lt.s32.totalorder %s1959_s14, %s1557_s16 }
 0x948   : > { %p1554_p2 = pnand %p1553_p1, %p2025_p11  ;;  %p1560_p7 = scmp.lt.s32.totalorder %s1558_s1, %s1552_s27 }
 0x94a   : > { %p1555_p6 = pneg %p1554_p2  ;;  %p1561_p9 = por %p1560_p7, %p1559_p12 }
 0x94c   : > { %p1562_p13 = pnand %p1561_p9, %p1555_p6 }
 0x9f1   : > { %v1019_v1 = vpop.f32.mrf.mxu0 }
 0x9f2   : > { %v1025_v3 = vadd.f32 %v1019_v1, %v862_v51 }
 0x9f3   : > { %v1337_v4 = vpop.f32.mrf.mxu0 }
 0x9f4   : > { %v1033_v5 = vadd.f32 %v1223_v2, %v1025_v3 }
 0x9f5   : > { %v1022_v6 = vpop.f32.mrf.mxu0 }
 0x9f6   : > { %1034 = vst.msk [vmem:[%s306_s8] sm:$0xff] %vm332_vm1, %v1033_v5 }
 0x9f7   : > { %v1338_v7 = vpop.f32.mrf.mxu0 }
 0x9f8   : > { %1565 = shalt.err (!%p1562_p13)
}
 0x9f9   : > { %s1566_s29 = scalar_lea.hbm %s1957_s10, 128  ;;  %s1570_s17 = scalar_lea.hbm %s2007_s6, 256 }
 0x9fa   : > { %p1567_p5 = scmp.ne.s32.totalorder %s1957_s10, %s1566_s29  ;;  %p1571_p4 = scmp.lt.s32.totalorder %s1957_s10, %s2007_s6 }
 0x9fb   : > { %p1572_p8 = scmp.lt.s32.totalorder %s1570_s17, %s1566_s29 }
 0x9fc   : > { %p1568_p10 = pnand %p1567_p5, %p2025_p11 }
 0x9fd   : > { %p1573_p3 = por %p1572_p8, %p1571_p4 }
 0x9fe   : > { %p1569_p0 = pneg %p1568_p10 }
 0xa00   : > { %p1574_p1 = pnand %p1573_p3, %p1569_p0 }
 0xa02   : > { %1577 = shalt.err (!%p1574_p1)
}
 0xa03   : > { %1350 = dma.vmem_to_hbm [thread:$0]  (%p2025_p11), %s1959_s14, 128, %s1957_s10, %s1041_s25  }
 0xa04 PF: > { %s1082_s12 = sand.u32 1, %s1612_s21   ;;  %p2026_p2 = scmp.ne.s32.totalorder %s2014_s28, 0 }
 0xa05   : > { %p2027_p6 = scmp.ge.s32.totalorder %s1624_s24, 2  ;;  %s1083_s8 = scalar_lea.sflag [#allocation4], %s1082_s12 }
 0xa07   : > { %p1365_p12 = pnand %p2027_p6, %p2026_p2 }
 0xa09   : > { %p1366_p7 = pneg %p1365_p12 }
 0xa0b   : > { %1603 = dma.done.wait (%p1366_p7), %s1083_s8, 512  }
 0xa0c   : > { %1605 = vsyncadd (%p1366_p7), %s1083_s8, 4294966784  ;;  %s1092_s20 = scalar_lea.sflag [#allocation10], %s1082_s12 }
 0xa0d   : > { %1607 = dma.done.wait (%p1366_p7), %s1092_s20, 128  }
 0xa0e   : > { %1609 = vsyncadd (%p1366_p7), %s1092_s20, 4294967168  ;;  %p24_p11 = scmp.ge.s32.totalorder %s1755_s19, 4   ;;  %s2028_s21 = smov %s1616_s22 }
 0xa0f   : > { %s2029_s22 = smov %s1620_s23  ;;  %s2030_s23 = smov %s1771_s7 }
 0xa10   : > { %s2031_s24 = smov %s1755_s19  ;;  %26 = sbr.rel (!%p24_p11) target bundleno = 10 (0xa), region = 116 }
 0xa15   :  { %1097 = vsyncpa [#allocation3], 1 }
 0xa16   :  { %1099 = vsyncpa [#allocation3 + $0x1], 1 }
 0xa17   :  { %1100 = vsyncpa [#allocation6], 1 }
 0xa18   :  { %1101 = vsyncpa [#allocation4], 1 }
 0xa19   :  { %1103 = vsyncpa [#allocation4 + $0x1], 1 }
 0xa1a   :  { %1104 = vsyncpa [#allocation10], 1 }
 0xa1b   :  { %1106 = vsyncpa [#allocation10 + $0x1], 1 }

</bundles_post_ra>
